<compile_context>
chip_gen: v7x
topology: tpu7x:2x2x1
jax: 0.10.0
libtpu: 0.0.40
codegen_flags: <defaults>
</compile_context>

<pallas_src>
import jax
import jax.numpy as jnp
from jax.experimental import pallas as pl
from jax.experimental.pallas import tpu as pltpu


_LEAKY_SLOPE = 0.2
_BLOCK_BYTE_BUDGET = 2 * 1024 * 1024   # ~2 MiB/block: near HBM roofline, and
                                        # 4 live copies stay well under scoped VMEM.


def _leaky_relu(v, slope=_LEAKY_SLOPE):
    return jnp.where(v > 0, v, slope * v)


# ---------------------------------------------------------------------------
# Stage 1: per-core partial sums of x over the pixel (lane) axis.
#   x_flat: (N*C_in, HWp)  ->  partials: (P, N*C_in, 1)
# Grid: (P "parallel", KT "arbitrary"); each core owns one p-slice and
# accumulates its KT pixel tiles in a VMEM scratch.
# ---------------------------------------------------------------------------
def _partial_sum_kernel(x_ref, out_ref, acc_ref):
    k = pl.program_id(1)

    @pl.when(k == 0)
    def _():
        acc_ref[...] = jnp.zeros_like(acc_ref)

    acc_ref[...] += jnp.sum(x_ref[...].astype(jnp.float32), axis=-1,
                            keepdims=True)

    @pl.when(k == pl.num_programs(1) - 1)
    def _():
        out_ref[...] = acc_ref[...]


# ---------------------------------------------------------------------------
# Stage 2: glob = y2 * y1 + y, broadcast along the lane (pixel) axis.
#   y2_flat: (N*C_out, HW2p), scale/bias: (N*C_out, 1) kept in f32.
# ---------------------------------------------------------------------------
def _broadcast_fma_kernel(y2_ref, scale_ref, bias_ref, o_ref):
    v = y2_ref[...].astype(jnp.float32)
    o_ref[...] = (v * scale_ref[...] + bias_ref[...]).astype(o_ref.dtype)


def _plan_pixel_tiling(total, rows, byte_budget, max_tile=None):
    """Pick (tile, padded_total) for a lane-dense pixel axis of length `total`.

    `tile` is a multiple of 128 (or == total when total <= 128), sized from a
    per-block byte budget; padded_total % tile == 0.  Prefers an exact divisor
    of `total` (no padding copy); otherwise pads once to a tile multiple.
    """
    budget_tile = max(128, (byte_budget // (rows * 4)) // 128 * 128)
    cap = budget_tile if max_tile is None else min(budget_tile, max_tile)
    cap = max(128, cap // 128 * 128)

    if total <= 128:
        return total, total                       # single tiny (legal) block

    cap = max(128, min(cap, (total // 128) * 128))

    # Largest multiple-of-128 exact divisor of `total` not exceeding the cap.
    best = None
    for t in range(128, cap + 1, 128):
        if total % t == 0:
            best = t
    if best is not None and best * 4 >= cap:
        return best, total                        # good divisor -> no padding

    # Fallback (e.g. H*W not 128-aligned): fixed cap-sized tile, pad once.
    tile = cap
    padded = -(-total // tile) * tile
    return tile, padded


def global_feature_pallas(y2, x, w1, b1, w2, b2):
    """Pallas implementation of globalFeature.forward(y2, x).

    y2: (N, C_out, H2, W2)       x: (N, C_in, H, W)
    w1: (C_out, C_in), b1: (C_out,)     -- nn.Linear(inSize, outSize)
    w2: (C_out, C_out), b2: (C_out,)    -- nn.Linear(outSize, outSize)
    returns (N, C_out, H2, W2)
    """
    n, c_in, h, w = x.shape
    n2, c_out, h2, w2_sp = y2.shape
    assert n2 == n and w1.shape == (c_out, c_in) and w2.shape == (c_out, c_out)

    hw = h * w
    hw2 = h2 * w2_sp
    rows1 = n * c_in
    rows2 = n * c_out

    # ---------------- stage 1: global sum over pixels ----------------------
    t1, hw_pad = _plan_pixel_tiling(hw, rows1, _BLOCK_BYTE_BUDGET,
                                    max_tile=max(128, hw // 2))
    x_flat = x.reshape(rows1, hw)                  # free reshape (contiguous dims)
    if hw_pad != hw:
        # Rare path (H*W not 128-aligned): pad once; zeros don't change the sum.
        x_flat = jnp.pad(x_flat, ((0, 0), (0, hw_pad - hw)))

    n_tiles = hw_pad // t1
    p = 2 if (n_tiles >= 2 and n_tiles % 2 == 0) else 1
    kt = n_tiles // p

    partials = pl.pallas_call(
        _partial_sum_kernel,
        out_shape=jax.ShapeDtypeStruct((p, rows1, 1), jnp.float32),
        grid_spec=pltpu.PrefetchScalarGridSpec(
            num_scalar_prefetch=0,
            grid=(p, kt),
            in_specs=[
                pl.BlockSpec((rows1, t1), lambda pi, k: (0, pi * kt + k)),
            ],
            out_specs=pl.BlockSpec((None, rows1, 1), lambda pi, k: (pi, 0, 0)),
            scratch_shapes=[pltpu.VMEM((rows1, 1), jnp.float32)],
        ),
        compiler_params=pltpu.CompilerParams(
            dimension_semantics=("parallel", "arbitrary")),
    )(x_flat)

    # Tiny (N,C_in)@(C_in,C_out) Linear + LeakyReLU layers: negligible compute,
    # done in plain JAX between the two HBM-streaming Pallas passes (keeps the
    # stage-1 reduction megacore-friendly, per perf review).
    mean = jnp.sum(partials, axis=0)[:, 0].reshape(n, c_in) * jnp.float32(1.0 / hw)
    y1 = _leaky_relu(mean @ w1.T.astype(jnp.float32) + b1.astype(jnp.float32))
    yv = _leaky_relu(y1 @ w2.T.astype(jnp.float32) + b2.astype(jnp.float32))

    # ---------------- stage 2: glob = y2 * y1 + y ---------------------------
    t2, hw2_pad = _plan_pixel_tiling(hw2, rows2, _BLOCK_BYTE_BUDGET,
                                     max_tile=max(128, hw2 // 2))
    y2_flat = y2.reshape(rows2, hw2)
    if hw2_pad != hw2:
        y2_flat = jnp.pad(y2_flat, ((0, 0), (0, hw2_pad - hw2)))

    scale = y1.reshape(rows2, 1)      # keep f32 inside the kernel
    bias = yv.reshape(rows2, 1)

    out_flat = pl.pallas_call(
        _broadcast_fma_kernel,
        out_shape=jax.ShapeDtypeStruct((rows2, hw2_pad), y2.dtype),
        grid_spec=pltpu.PrefetchScalarGridSpec(
            num_scalar_prefetch=0,
            grid=(hw2_pad // t2,),
            in_specs=[
                pl.BlockSpec((rows2, t2), lambda k: (0, k)),
                pl.BlockSpec((rows2, 1), lambda k: (0, 0)),
                pl.BlockSpec((rows2, 1), lambda k: (0, 0)),
            ],
            out_specs=pl.BlockSpec((rows2, t2), lambda k: (0, k)),
        ),
        compiler_params=pltpu.CompilerParams(
            dimension_semantics=("parallel",)),
    )(y2_flat, scale, bias)

    if hw2_pad != hw2:
        out_flat = out_flat[:, :hw2]
    return out_flat.reshape(n, c_out, h2, w2_sp)


if __name__ == "__main__":
    # Small shapes consistent with the module: batch=2, inSize=4, outSize=8, 16x16.
    N, C_IN, C_OUT, H, W = 2, 4, 8, 16, 16

    key = jax.random.PRNGKey(0)
    kx, ky2, kw1, kb1, kw2, kb2 = jax.random.split(key, 6)

    x = jax.random.normal(kx, (N, C_IN, H, W), dtype=jnp.float32)
    y2 = jax.random.normal(ky2, (N, C_OUT, H, W), dtype=jnp.float32)

    # nn.Linear weight layout: (out_features, in_features)
    w1 = jax.random.normal(kw1, (C_OUT, C_IN), dtype=jnp.float32) * 0.1
    b1 = jax.random.normal(kb1, (C_OUT,), dtype=jnp.float32) * 0.1
    w2 = jax.random.normal(kw2, (C_OUT, C_OUT), dtype=jnp.float32) * 0.1
    b2 = jax.random.normal(kb2, (C_OUT,), dtype=jnp.float32) * 0.1

    glob = global_feature_pallas(y2, x, w1, b1, w2, b2)
    glob = jax.block_until_ready(glob)

    # Pure-JAX reference (matches the PyTorch forward).
    def _lrelu(v):
        return jnp.where(v > 0, v, 0.2 * v)

    y_mean = jnp.mean(x, axis=(2, 3))
    y1_ref = _lrelu(y_mean @ w1.T + b1)
    y_ref = _lrelu(y1_ref @ w2.T + b2)
    glob_ref = y2 * y1_ref[:, :, None, None] + y_ref[:, :, None, None]

    assert glob.shape == (N, C_OUT, H, W)
    assert jnp.allclose(glob, glob_ref, atol=1e-5), "mismatch vs reference"

    print("KERNEL_OK")
</pallas_src>

<mosaic_0001>
module attributes {stable_mosaic.version = 11 : i64} {
  func.func @_partial_sum_kernel(%arg0: i32, %arg1: i32, %arg2: memref<8x128xf32, #tpu.memory_space<vmem>>, %arg3: memref<1x8x1xf32, #tpu.memory_space<vmem>>, %arg4: memref<8x1xf32, #tpu.memory_space<vmem>>) attributes {dimension_semantics = [#tpu.dimension_semantics<parallel>, #tpu.dimension_semantics<arbitrary>], iteration_bounds = array<i64: 2, 1>, scalar_prefetch = 0 : i64, scratch_operands = 1 : i64, tpu.core_type = #tpu.core_type<tc>, window_params = [{transform_indices = @transform_0, window_bounds = array<i64: 8, 128>}, {transform_indices = @transform_1, window_bounds = array<i64: 1, 8, 1>}]} {
    %c0_i32 = arith.constant 0 : i32
    %0 = arith.cmpi eq, %arg1, %c0_i32 : i32
    %1 = arith.extui %0 : i1 to i32
    %c0_i32_0 = arith.constant 0 : i32
    %2 = arith.cmpi ne, %1, %c0_i32_0 : i32
    scf.if %2 {
      %cst_8 = arith.constant 0.000000e+00 : f32
      %12 = vector.broadcast %cst_8 : f32 to vector<8x1xf32>
      %c0_9 = arith.constant 0 : index
      %c0_10 = arith.constant 0 : index
      %13 = vector.load %arg4[%c0_9, %c0_10] : memref<8x1xf32, #tpu.memory_space<vmem>>, vector<8x1xf32>
      tpu.vector_store %arg4[%c0_9, %c0_10], %12 {strides = array<i32>} : memref<8x1xf32, #tpu.memory_space<vmem>>, vector<8x1xf32>,
    } else {
    }
    %c0 = arith.constant 0 : index
    %c0_1 = arith.constant 0 : index
    %3 = vector.load %arg4[%c0, %c0_1] : memref<8x1xf32, #tpu.memory_space<vmem>>, vector<8x1xf32>
    %c0_2 = arith.constant 0 : index
    %c0_3 = arith.constant 0 : index
    %4 = vector.load %arg2[%c0_2, %c0_3] : memref<8x128xf32, #tpu.memory_space<vmem>>, vector<8x128xf32>
    %cst = arith.constant dense<0.000000e+00> : vector<8xf32>
    %5 = vector.multi_reduction <add>, %4, %cst [1] : vector<8x128xf32> to vector<8xf32>
    %6 = vector.shape_cast %5 : vector<8xf32> to vector<8x1xf32>
    %7 = arith.addf %3, %6 : vector<8x1xf32>
    %c0_4 = arith.constant 0 : index
    %c0_5 = arith.constant 0 : index
    %8 = vector.load %arg4[%c0_4, %c0_5] : memref<8x1xf32, #tpu.memory_space<vmem>>, vector<8x1xf32>
    tpu.vector_store %arg4[%c0_4, %c0_5], %7 {strides = array<i32>} : memref<8x1xf32, #tpu.memory_space<vmem>>, vector<8x1xf32>,
    %c0_i32_6 = arith.constant 0 : i32
    %9 = arith.cmpi eq, %arg1, %c0_i32_6 : i32
    %10 = arith.extui %9 : i1 to i32
    %c0_i32_7 = arith.constant 0 : i32
    %11 = arith.cmpi ne, %10, %c0_i32_7 : i32
    scf.if %11 {
      %c0_8 = arith.constant 0 : index
      %c0_9 = arith.constant 0 : index
      %12 = vector.load %arg4[%c0_8, %c0_9] : memref<8x1xf32, #tpu.memory_space<vmem>>, vector<8x1xf32>
      %c0_10 = arith.constant 0 : index
      %c0_11 = arith.constant 0 : index
      %c0_12 = arith.constant 0 : index
      %13 = vector.load %arg3[%c0_10, %c0_11, %c0_12] : memref<1x8x1xf32, #tpu.memory_space<vmem>>, vector<1x8x1xf32>
      %14 = vector.shape_cast %13 : vector<1x8x1xf32> to vector<8x1xf32>
      %15 = vector.shape_cast %12 : vector<8x1xf32> to vector<1x8x1xf32>
      tpu.vector_store %arg3[%c0_10, %c0_11, %c0_12], %15 {strides = array<i32>} : memref<1x8x1xf32, #tpu.memory_space<vmem>>, vector<1x8x1xf32>,
    } else {
    }
    return
  }
  func.func @transform_0(%arg0: i32, %arg1: i32) -> (i32, i32) {
    %c1_i32 = arith.constant 1 : i32
    %0 = arith.muli %arg0, %c1_i32 : i32
    %1 = arith.addi %0, %arg1 : i32
    %c0_i32 = arith.constant 0 : i32
    %c0_i32_0 = arith.constant 0 : i32
    return %c0_i32, %1 : i32, i32
  }
  func.func @transform_1(%arg0: i32, %arg1: i32) -> (i32, i32, i32) {
    %c0_i32 = arith.constant 0 : i32
    %c0_i32_0 = arith.constant 0 : i32
    %c0_i32_1 = arith.constant 0 : i32
    return %arg0, %c0_i32, %c0_i32_0 : i32, i32, i32
  }
}

</mosaic_0001>

<bundles_post_ra>
// kernel: tpu_custom_call.1
= control target key start
LH: loop header
LB: loop body
LE: loop exit
PB: predicated region body
PF: predicated region fallthrough
CT: control target
= control target key end

     0   :  { %6 = vsyncpa [#allocation4], 0  ;;  %s526_s0 = inlined_call_operand.hbm [shape: f32[8,256], index: 0, kind: input, shape index: {}]   ;;  %s527_s1 = inlined_call_operand.vmem [shape: f32[2,8,1], index: 1, kind: output, shape index: {}]  }
   0x1   :  { %8 = vsyncpa [#allocation4 + $0x1], 0  ;;  %s401_s6 = smov 0   ;;  %s403_s7 = smov 0  }
   0x2   :  { %s405_s8 = smov 0   ;;  %s407_s9 = smov 0  }
   0x3   :  { %s409_s10 = smov 0   ;;  %s411_s11 = smov 0  }
   0x4 LB: > { %s240_s12 = sadd.s32 4294967295, %s387_s11   ;;  %s26_s13 = sadd.s32 1, %s383_s10  ;;  %s387_s11 = sphi %s411_s11, %s14_s11   ;;  %s383_s10 = sphi %s409_s10, %s537_s10   ;;  %s379_s9 = sphi %s407_s9, %s536_s9   ;;  %s375_s8 = sphi %s405_s8, %s535_s8   ;;  %s371_s7 = sphi %s403_s7, %s534_s7   ;;  %s367_s6 = sphi %s401_s6, %s533_s6  }
   0x5   : > { %p28_p0 = scmp.ge.s32.totalorder %s26_s13, 2  ;;  %s35_s14 = sadd.s32 1, %s375_s8 }
   0x6   : > { %p42_p1 = scmp.ne.s32.totalorder %s375_s8, %s371_s7  ;;  %p43_p2 = scmp.eq.s32.totalorder %s387_s11, 0 }
   0x7   : > { %s539_s13 = smov (%p28_p0, %s26_s13), 0  ;;  %p48_p4 = scmp.ne.s32.totalorder %s371_s7, %s367_s6 }
   0x8   : > { %p437_p3 = por %p43_p2, %p42_p1  ;;  %s32_s16 = ssub.s32 %s383_s10, %s539_s13 }
   0x9   : > { %p49_p5 = scmp.eq.s32.totalorder %s240_s12, 0  ;;  %p33_p6 = scmp.eq.s32.totalorder %s32_s16, 0 }
   0xa   : > { %p257_p8 = scmp.lt.s32.totalorder %s387_s11, 2  ;;  %s98_s19 = sand.u32 1, %s375_s8  }
   0xb   : > { %p444_p7 = por %p49_p5, %p48_p4  ;;  %s245_s20 = sshll.u32 %s383_s10, 7 }
   0xc   : > { %s450_s18 = scalar_select %p33_p6, %s375_s8, %s35_s14  }
   0xd   : > { %s244_s21 = sshll.u32 %s98_s19, 3  ;;  %s457_s24 = scalar_lea.hbm %s526_s0, %s245_s20 }
   0xe   : > { %s102_s25 = scalar_lea.vmem [#allocation3], %s244_s21  ;;  %p461_p9 = pnand %p257_p8, %p437_p3 }
   0xf   : > { %s110_s26 = sshll.u32 %s102_s25, 4  ;;  %s99_s28 = scalar_lea.sflag [#allocation4], %s98_s19  ;;  %s465_s26 = int_to_ptr.vmem [resolvable:$true] %s110_s26 }
  0x10   : > { %s307_s29 = scalar_lea.hbm %s457_s24, 128  ;;  %p309_p13 = pneg %p461_p9 }
  0x11   : > { %p308_p12 = scmp.ne.s32.totalorder %s457_s24, %s307_s29  ;;  %s312_s3 = scalar_lea.hbm %s526_s0, 256 }
  0x12   : > { %p313_p2 = scmp.lt.u32.totalorder %s457_s24, %s526_s0  ;;  %p314_p3 = scmp.lt.u32.totalorder %s312_s3, %s307_s29 }
  0x13   : > { %p310_p0 = pnand %p309_p13, %p308_p12  ;;  %p316_p5 = scmp.lt.u32.totalorder %s307_s29, %s457_s24 }
  0x14   : > { %p315_p4 = por %p314_p3, %p313_p2 }
  0x15   : > { %p311_p1 = pneg %p310_p0 }
  0x16   : > { %p317_p6 = por %p316_p5, %p315_p4 }
  0x18   : > { %p318_p8 = pnand %p317_p6, %p311_p1 }
  0x1a   : > { %321 = shalt.err (!%p318_p8)
}
  0x1b   : > { %s322_s6 = scalar_lea.vmem %s465_s26, 128  ;;  %s389_s12 = smov [#allocation3]  }
  0x1c   : > { %p323_p12 = scmp.ne.s32.totalorder %s465_s26, %s322_s6  ;;  %s327_s14 = sshll.u32 %s389_s12, 4  ;;  %s328_s14 = int_to_ptr.vmem [resolvable:$false] %s327_s14 }
  0x1d   : > { %s329_s15 = scalar_lea.vmem %s328_s14, 256  ;;  %p330_p11 = scmp.lt.s32.totalorder %s465_s26, %s328_s14 }
  0x1e   : > { %p325_p0 = pnand %p323_p12, %p309_p13  ;;  %p331_p2 = scmp.lt.s32.totalorder %s329_s15, %s322_s6 }
  0x20   : > { %p326_p10 = pneg %p325_p0  ;;  %p332_p3 = por %p331_p2, %p330_p11 }
  0x22   : > { %p333_p4 = pnand %p332_p3, %p326_p10 }
  0x24   : > { %336 = shalt.err (!%p333_p4)
}
  0x25   : > { %256 = dma.hbm_to_vmem [thread:$0]  (!%p461_p9), %s457_s24, 128, %s465_s26, %s99_s28  }
  0x26   : > { %p531_p1 = scmp.lt.s32.totalorder %s387_s11, 3  ;;  %p532_p5 = scmp.ge.s32.totalorder %s387_s11, 1 }
  0x28   : > { %p116_p13 = pnand %p532_p5, %p531_p1 }
  0x29   : > { %s121_s16 = sand.u32 (!%p116_p13), 1, %s371_s7  }
  0x2a   : > { %119 = sbr.rel (%p116_p13) target bundleno = 204 (0xcc), region = 24  ;;  %s247_s19 = sshll.u32 (!%p116_p13), %s121_s16, 3 }
  0x2b   : > { %s122_s20 = scalar_lea.sflag (!%p116_p13), [#allocation4], %s121_s16  ;;  %s125_s21 = scalar_lea.vmem (!%p116_p13), [#allocation3], %s247_s19 }
  0x31   : > { %362 = dma.done.wait (%p444_p7), %s122_s20, 128  }
  0x32   : > { %364 = vsyncadd (%p444_p7), %s122_s20, 4294967168  ;;  %vm152_vm0 = vcmask 7168   ;;  %v390_v0 = vmov 0.0   ;;  %v155_v1 = vld [vmem:[%s125_s21] sm:$0xff]  ;;  %p144_p9 = scmp.lt.s32.totalorder %s379_s9, 1 }
  0x33   : > { %153 = vst.msk [vmem:[#allocation2] sm:$0xff] %vm152_vm0, %v390_v0  ;;  %156 = vadd.xlane.f32.xlu0 %v155_v1 }
  0x34   : > { %s541_s9 = smov (!%p144_p9, %s379_s9), 1 }
  0x35   : > { %s248_s22 = sshll.u32 %s541_s9, 3 }
  0x36   : > { %s147_s25 = scalar_lea.vmem %s527_s1, %s248_s22 }
  0x3a   : > { %v154_v2 = vld [vmem:[#allocation2] sm:$0xff] }
  0xc0   : > { %v157_v3 = vpop.xlane.xlu0 %156 }
  0xc1   : > { %v158_v4 = vadd.f32 %v157_v3, %v154_v2 }
  0xc3   : > { %160 = vst.msk [vmem:[#allocation2] sm:$0xff] %vm152_vm0, %v158_v4 }
  0xca   : > { %v164_v5 = vld [vmem:[#allocation2] sm:$0xff] }
  0xcb   : > { %165 = vst.msk [vmem:[%s147_s25] sm:$0xff] %vm152_vm0, %v164_v5 }
  0xcc PF: > { %s14_s11 = sadd.s32 1, %s387_s11   ;;  %s533_s6 = smov %s371_s7 }
  0xcd   : > { %p11_p7 = scmp.ge.s32.totalorder %s14_s11, 4   ;;  %s534_s7 = smov %s375_s8 }
  0xce   : > { %s535_s8 = smov %s450_s18  ;;  %s536_s9 = smov %s383_s10 }
  0xcf   : > { %s537_s10 = smov %s539_s13  ;;  %13 = sbr.rel (!%p11_p7) target bundleno = 4 (0x4), region = 72 }
  0xd6   :  { %185 = vsyncpa [#allocation4], 1 }
  0xd7   :  { %187 = vsyncpa [#allocation4 + $0x1], 1 }

</bundles_post_ra>
